<compile_context>
chip_gen: v5e
topology: v5e:2x2
jax: 0.10.0
libtpu: 0.0.40
codegen_flags: <defaults>
</compile_context>

<pallas_src>
import functools

import jax
import jax.numpy as jnp
from jax import lax
from jax.experimental import pallas as pl
from jax.experimental.pallas import tpu as pltpu


def _round_up(v: int, m: int) -> int:
    return ((v + m - 1) // m) * m


def _extract_sum(x, n, col, *, largest):
    """f32 sum of the n largest (or smallest) values per row via iterative extraction.

    x:   (tm, hw) in its native dtype (bf16 kept packed on v6e/v7x).
    col: (1, hw) int32 lane indices (broadcast in-register, never (tm, hw)).
    """
    tm, hw = x.shape
    sentinel = jnp.array(-jnp.inf if largest else jnp.inf, x.dtype)

    def body(work, acc):
        if largest:
            m = jnp.max(work, axis=1, keepdims=True)
        else:
            m = jnp.min(work, axis=1, keepdims=True)
        acc = acc + m.astype(jnp.float32)
        is_m = work == m
        # Knock out one occurrence of the extremum (first along the lane axis).
        # Which duplicate gets picked does not affect the top/bottom-k *sum*.
        first = jnp.min(jnp.where(is_m, col, hw), axis=1, keepdims=True)
        work = jnp.where(col == first, sentinel, work)
        return work, acc

    acc = jnp.zeros((tm, 1), jnp.float32)
    work = x
    if n <= 8:
        # Small k: static unroll gives the LLO scheduler full visibility.
        for _ in range(n):
            work, acc = body(work, acc)
    else:
        # TODO(synk): for large / fractional n (n >~ 50) replace iterative
        # extraction (O(n*HW), XLU-bound) with a per-row value-threshold
        # bisection (~30 lane count-reduction passes) + one masked sum.
        work, acc = lax.fori_loop(0, n, lambda i, carry: body(*carry), (work, acc))
    return acc


def _weldon_kernel(x_ref, o_ref, *, n_max: int, n_min: int):
    """One grid step: a (tm, HW) tile of rows -> (tm, 1) pooled outputs."""
    x = x_ref[...]                      # native dtype; no full-tile upcast
    tm, hw = x.shape

    col = None
    if n_max > 1 or n_min > 1:
        col = lax.broadcasted_iota(jnp.int32, (1, hw), 1)

    # ---- top-nMax mean (== mean of torch.sort(descending=True)[..., :nMax]) ----
    if n_max == 1:
        top_sum = jnp.max(x, axis=1, keepdims=True).astype(jnp.float32)
    else:
        top_sum = _extract_sum(x, n_max, col, largest=True)
    out = top_sum / jnp.float32(n_max)

    # ---- bottom-nMin mean ----
    if n_min == 1:
        out = out + jnp.min(x, axis=1, keepdims=True).astype(jnp.float32)
    elif n_min > 1:
        out = out + _extract_sum(x, n_min, col, largest=False) / jnp.float32(n_min)

    o_ref[...] = out.astype(o_ref.dtype)


def weldon_pooling(x, n_max: int = 1, n_min: int | None = None, *, tm: int | None = None):
    """WeldonPooling forward.  x: (B, C, H, W) or (C, H, W)."""
    if n_min is None:
        n_min = n_max

    squeeze_batch = False
    if x.ndim == 3:
        x = x[None]
        squeeze_batch = True
    if x.ndim != 4:
        raise ValueError("error in WeldonPooling: incorrect input size")

    b, c, h, w = x.shape
    hw = h * w

    # Fractional nMax/nMin (a ratio of the spatial size), same as the torch code.
    def _resolve(n):
        if n <= 0:
            return 0
        if n < 1:
            return max(1, int(n * hw))
        return int(n)

    # Clamp to hw so iterative extraction never consumes +-inf sentinels.
    n_max_i = min(_resolve(n_max), hw)
    n_min_i = min(_resolve(n_min), hw)
    if n_max_i <= 0:
        raise ValueError("nMax must resolve to a positive count")

    rows = b * c
    x2d = x.reshape(rows, hw)           # contiguous view; no HBM copy, no padding
    dtype_size = x2d.dtype.itemsize
    fast = n_max_i == 1 and n_min_i <= 1

    # --- Row-tile sizing against a conservative VMEM budget (safe on v7x's
    #     64 MiB physical VMEM as well as v5e/v6e's 128 MiB).  Per row:
    #     double-buffered input block + double-buffered lane-padded (tm,1)
    #     output block + in-kernel temporaries (f32-equivalent slabs).
    temps = 1 if fast else 4
    per_row_bytes = 2 * hw * dtype_size + 2 * 128 * dtype_size + temps * hw * 4
    budget_bytes = 20 * 1024 * 1024

    rows8 = _round_up(rows, 8)
    if tm is None:
        tm_cap = max(8, (budget_bytes // per_row_bytes) // 8 * 8)
        tm_cap = min(tm_cap, rows8)
        steps = pl.cdiv(rows, tm_cap)
        # v7x megacore balance: keep the parallel step count even (>1) so the
        # two TensorCores split the rows evenly; split a single big tile in two
        # when there are enough rows so both cores get work at all.
        if steps == 1 and rows8 >= 16:
            steps = 2
        elif steps > 1 and steps % 2 == 1:
            steps += 1
        tm = max(8, _round_up(pl.cdiv(rows, steps), 8))
    else:
        tm = max(8, _round_up(tm, 8))
    tm = min(tm, rows8)
    if tm >= rows:
        tm = rows                       # full-extent block: exempt from 8-divisibility

    grid = (pl.cdiv(rows, tm),)         # overhanging last tile; OOB rows discarded

    # VMEM ceiling derived from the actual tile footprint + margin (not a flat
    # 48 MiB, which leaves too little headroom on v7x).
    est_bytes = tm * per_row_bytes
    vmem_limit = min(max(int(est_bytes * 1.5) + (4 << 20), 8 << 20), 40 << 20)

    kernel = functools.partial(_weldon_kernel, n_max=n_max_i, n_min=n_min_i)

    # Advisory cost: one streaming read of the input, trivial writeback,
    # a few cross-lane reductions + compares per extracted element.
    cost = pl.CostEstimate(
        flops=(n_max_i + n_min_i + 2) * rows * hw,
        transcendentals=0,
        bytes_accessed=rows * hw * dtype_size + rows * dtype_size,
    )

    out2d = pl.pallas_call(
        kernel,
        out_shape=jax.ShapeDtypeStruct((rows, 1), x.dtype),
        grid_spec=pltpu.PrefetchScalarGridSpec(
            num_scalar_prefetch=0,
            grid=grid,
            in_specs=[pl.BlockSpec((tm, hw), lambda i: (i, 0))],
            out_specs=pl.BlockSpec((tm, 1), lambda i: (i, 0)),
        ),
        compiler_params=pltpu.CompilerParams(
            dimension_semantics=("parallel",),
            vmem_limit_bytes=vmem_limit,
        ),
        cost_estimate=cost,
    )(x2d)

    out = out2d.reshape(b, c, 1, 1)
    if squeeze_batch:
        out = out.reshape(c, 1, 1)
    return out


def _weldon_ref(x, n_max=1, n_min=None):
    """Pure-JAX reference mirroring the torch implementation."""
    if n_min is None:
        n_min = n_max
    b, c, h, w = x.shape
    flat = x.reshape(b, c, h * w)
    srt = jnp.sort(flat, axis=-1)[..., ::-1]  # descending
    out = jnp.sum(srt[..., :n_max], axis=-1, keepdims=True) / n_max
    if n_min > 0:
        out = out + jnp.sum(srt[..., h * w - n_min:], axis=-1, keepdims=True) / n_min
    return out.reshape(b, c, 1, 1)


if __name__ == "__main__":
    key = jax.random.PRNGKey(0)
    B, C, H, W = 2, 4, 16, 16
    x = jax.random.normal(key, (B, C, H, W), dtype=jnp.float32)

    # Default module configuration: nMax=1, nMin=nMax=1 (max + min fast path).
    out = jax.block_until_ready(weldon_pooling(x, n_max=1, n_min=None))
    ref = _weldon_ref(x, n_max=1, n_min=1)
    assert out.shape == (B, C, 1, 1), out.shape
    assert jnp.allclose(out, ref, atol=1e-5, rtol=1e-5), (out, ref)

    # Multi-element top/bottom configuration (general extraction path).
    out3 = jax.block_until_ready(weldon_pooling(x, n_max=3, n_min=2))
    ref3 = _weldon_ref(x, n_max=3, n_min=2)
    assert jnp.allclose(out3, ref3, atol=1e-5, rtol=1e-5), (out3, ref3)

    # Non-128-aligned spatial size (ragged lane reductions, no wrapper pad)
    # and non-multiple-of-8 row count (overhanging last tile), 3-D input path.
    x7 = jax.random.normal(jax.random.PRNGKey(1), (5, 7, 7), dtype=jnp.float32)
    out7 = jax.block_until_ready(weldon_pooling(x7, n_max=2, n_min=1))
    ref7 = _weldon_ref(x7[None], n_max=2, n_min=1).reshape(5, 1, 1)
    assert out7.shape == (5, 1, 1), out7.shape
    assert jnp.allclose(out7, ref7, atol=1e-5, rtol=1e-5), (out7, ref7)

    # bf16 input exercises the packed native-dtype compute path.
    xb = jax.random.normal(jax.random.PRNGKey(2), (B, C, 14, 14), dtype=jnp.bfloat16)
    outb = jax.block_until_ready(weldon_pooling(xb, n_max=1, n_min=1))
    refb = _weldon_ref(xb.astype(jnp.float32), n_max=1, n_min=1)
    assert jnp.allclose(outb.astype(jnp.float32), refb, atol=1e-2, rtol=1e-2)

    print("KERNEL_OK")
</pallas_src>

<mosaic_0001>
module attributes {stable_mosaic.version = 11 : i64} {
  func.func @_weldon_kernel(%arg0: i32, %arg1: memref<8x256xf32, #tpu.memory_space<vmem>>, %arg2: memref<8x1xf32, #tpu.memory_space<vmem>>) attributes {dimension_semantics = [#tpu.dimension_semantics<parallel>], iteration_bounds = array<i64: 1>, scalar_prefetch = 0 : i64, scratch_operands = 0 : i64, tpu.core_type = #tpu.core_type<tc>, window_params = [{transform_indices = @transform_0, window_bounds = array<i64: 8, 256>}, {transform_indices = @transform_1, window_bounds = array<i64: 8, 1>}]} {
    %c0 = arith.constant 0 : index
    %c0_0 = arith.constant 0 : index
    %0 = vector.load %arg1[%c0, %c0_0] : memref<8x256xf32, #tpu.memory_space<vmem>>, vector<8x256xf32>
    %cst = arith.constant dense<0xFF800000> : vector<8xf32>
    %1 = vector.multi_reduction <maximumf>, %0, %cst [1] : vector<8x256xf32> to vector<8xf32>
    %2 = vector.shape_cast %1 : vector<8xf32> to vector<8x1xf32>
    %cst_1 = arith.constant 1.000000e+00 : f32
    %3 = vector.broadcast %cst_1 : f32 to vector<8x1xf32>
    %4 = arith.divf %2, %3 : vector<8x1xf32>
    %cst_2 = arith.constant dense<0x7F800000> : vector<8xf32>
    %5 = vector.multi_reduction <minimumf>, %0, %cst_2 [1] : vector<8x256xf32> to vector<8xf32>
    %6 = vector.shape_cast %5 : vector<8xf32> to vector<8x1xf32>
    %7 = arith.addf %4, %6 : vector<8x1xf32>
    %c0_3 = arith.constant 0 : index
    %c0_4 = arith.constant 0 : index
    %8 = vector.load %arg2[%c0_3, %c0_4] : memref<8x1xf32, #tpu.memory_space<vmem>>, vector<8x1xf32>
    tpu.vector_store %arg2[%c0_3, %c0_4], %7 {strides = array<i32>} : memref<8x1xf32, #tpu.memory_space<vmem>>, vector<8x1xf32>,
    return
  }
  func.func @transform_0(%arg0: i32) -> (i32, i32) {
    %c0_i32 = arith.constant 0 : i32
    %c0_i32_0 = arith.constant 0 : i32
    return %arg0, %c0_i32 : i32, i32
  }
  func.func @transform_1(%arg0: i32) -> (i32, i32) {
    %c0_i32 = arith.constant 0 : i32
    %c0_i32_0 = arith.constant 0 : i32
    return %arg0, %c0_i32 : i32, i32
  }
}

</mosaic_0001>

<bundles_post_ra>
// kernel: tpu_custom_call.1
= control target key start
LH: loop header
LB: loop body
LE: loop exit
PB: predicated region body
PF: predicated region fallthrough
CT: control target
= control target key end

     0   :  { %6 = vsyncpa [#allocation3], 0  ;;  %s65_s9 = smov [#allocation2]   ;;  %s82_s0 = inlined_call_operand.hbm [shape: f32[8,256], index: 0, kind: input, shape index: {}]   ;;  %s83_s1 = inlined_call_operand.vmem [shape: f32[8,1], index: 1, kind: output, shape index: {}]  }
   0x1   :  { %s12_s8 = sshll.u32 %s82_s0, 4  ;;  %s14_s10 = sshll.u32 %s65_s9, 4  ;;  %s13_s8 = int_to_ptr.hbm [resolvable:$true] %s12_s8  ;;  %s15_s10 = int_to_ptr.vmem [resolvable:$true] %s14_s10 }
   0x2   :  { %17 = dma.hbm_to_vmem [thread:$0]  %s13_s8, 256, %s15_s10, [#allocation3]  }
   0x3   :  { %63 = dma.done.wait [#allocation3], 256  }
   0x4   :  { %64 = vsyncadd [#allocation3], 4294967040  ;;  %v22_v0 = vld [vmem:[#allocation2] sm:$0xff]  ;;  %v23_v1 = vld [vmem:[#allocation2 + $0x8] sm:$0xff]  ;;  %vm31_vm0 = vcmask 7168  }
   0x5   :  { %v24_v2 = vmax.f32 %v22_v0, %v23_v1  ;;  %v27_v3 = vmin.f32 %v22_v0, %v23_v1 }
   0x7   :  { %25 = vmax.xlane.f32.xlu0 %v24_v2 }
   0xf   :  { %28 = vmin.xlane.f32.xlu0 %v27_v3 }
  0x7a   :  { %v26_v4 = vpop.xlane.xlu0 %25 }
  0x82   :  { %v29_v5 = vpop.xlane.xlu0 %28 }
  0x83   :  { %v30_v6 = vadd.f32 %v29_v5, %v26_v4 }
  0x85   :  { %32 = vst.msk [vmem:[%s83_s1] sm:$0xff] %vm31_vm0, %v30_v6 }
  0x86   :  { %37 = vsyncpa [#allocation3], 1 }

</bundles_post_ra>
